<compile_context>
chip_gen: v7x
topology: tpu7x:2x2x1
jax: 0.10.0
libtpu: 0.0.40
codegen_flags: <defaults>
</compile_context>

<pallas_src>
import functools

import jax
import jax.numpy as jnp
from jax import lax
from jax.experimental import pallas as pl
from jax.experimental.pallas import tpu as pltpu

# -------------------- deterministic "module parameters" --------------------
CUTOFF = 5.0       # radial cutoff for cosine cutoff function
ETA_RAD = 4.0      # Gaussian width of radial symmetry functions
ETA_ANG = 0.1      # Gaussian width of angular symmetry functions
N_RBF = 16         # n_basis_radial
ZETAS = (1.0, 2.0, 4.0, 8.0)
LAMBDAS = (1.0, -1.0)
N_ANG = len(ZETAS) * len(LAMBDAS)   # n_basis_angular = 8
N_ATOM_BASIS = N_RBF + N_ANG        # 24

# radial Gaussian centers: mu_k = MU_MIN + k * MU_STEP, k = 0..N_RBF-1
MU_MIN = 0.8
MU_STEP = (CUTOFF - 0.2 - MU_MIN) / (N_RBF - 1)

# The in-kernel repeated-squaring power path is specialized to these values.
assert ZETAS == (1.0, 2.0, 4.0, 8.0) and LAMBDAS == (1.0, -1.0)

TILE_MAX = 8192     # max pairs/triples per grid step (multiple of 256)
_LANE_ALIGN = 256   # tile granularity (full-height MXU passes + 8x128 tiling)


def _round_up(x, m):
    return ((x + m - 1) // m) * m


@functools.lru_cache(maxsize=1)
def _detect_tpu():
    """Returns (num_cores, vmem_budget_bytes, vmem_limit_bytes_or_None)."""
    kind = ""
    try:
        kind = (getattr(jax.devices()[0], "device_kind", "") or "").lower()
    except Exception:  # pragma: no cover - defensive, keep defaults
        pass
    if "7" in kind:                       # v7x: 2 TCs/chip, 64 MiB VMEM per TC
        return 2, 32 << 20, 48 << 20
    if "v6" in kind:                      # v6e: 1 TC, 128 MiB VMEM
        return 1, 64 << 20, 96 << 20
    if "v5" in kind:                      # v5e/v5p: keep f32, modest budget
        return 1, 40 << 20, 64 << 20
    # unknown generation: stay under the default scoped-VMEM limit
    return 1, 12 << 20, None


def _cosine_cutoff(d, cutoff):
    fc = 0.5 * (jnp.cos(jnp.pi * d / cutoff) + 1.0)
    return jnp.where(d < cutoff, fc, 0.0)


# ------------------------------ Pallas kernels ------------------------------
def _radial_kernel(feat_ref, out_ref, *, n_atoms, cutoff, eta):
    """Lane-dense wACSF radial basis + one-hot scatter_add for one chunk of pairs.

    feat_ref: (3, TILE) f32, rows = [d_ij, Z_j, idx_i (as f32)]
    out_ref : (n_atoms, N_RBF) f32 resident accumulator (one per core).
    """
    @pl.when(pl.program_id(1) == 0)
    def _():
        out_ref[...] = jnp.zeros_like(out_ref)

    d = feat_ref[0:1, :]                        # (1, T)
    zj = feat_ref[1:2, :]                       # (1, T)
    # indices round-trip through f32: exact for n_atoms < 2**24
    idx = feat_ref[2:3, :].astype(jnp.int32)    # (1, T)

    # Gaussian centers mu as an (N_RBF, 1) column built from an iota
    # (compile-time constants; no extra VMEM operand / DMA).
    mu = MU_MIN + MU_STEP * lax.broadcasted_iota(
        jnp.int32, (N_RBF, 1), 0).astype(jnp.float32)

    fc = _cosine_cutoff(d, cutoff)                               # (1, T)
    diff = d - mu                                                # (N_RBF, T)
    g = (zj * fc) * jnp.exp(-eta * diff * diff)                  # (N_RBF, T)

    # scatter_add(idx_i) == one-hot contraction over the lane (pair) axis.
    # One-hot built from (1,T) == (n_atoms,1): no (n_atoms, T) iota materialized.
    atom_col = lax.broadcasted_iota(jnp.int32, (n_atoms, 1), 0)  # (n_atoms, 1)
    onehot = (idx == atom_col).astype(jnp.float32)               # (n_atoms, T)
    out_ref[...] += lax.dot_general(
        onehot, g, (((1,), (1,)), ((), ())),
        preferred_element_type=jnp.float32)


def _angular_kernel(feat_ref, out_ref, *, n_atoms, cutoff, eta):
    """Lane-dense wACSF angular basis + one-hot scatter_add for one chunk of triples.

    feat_ref: (6, TILE) f32, rows = [d_ij, d_ik, Z_j, Z_k, cos_theta, idx_i (as f32)]
    out_ref : (n_atoms, N_ANG) f32 resident accumulator (one per core).
    """
    @pl.when(pl.program_id(1) == 0)
    def _():
        out_ref[...] = jnp.zeros_like(out_ref)

    dij = feat_ref[0:1, :]
    dik = feat_ref[1:2, :]
    zj = feat_ref[2:3, :]
    zk = feat_ref[3:4, :]
    cos = feat_ref[4:5, :]
    idx = feat_ref[5:6, :].astype(jnp.int32)

    fc = _cosine_cutoff(dij, cutoff) * _cosine_cutoff(dik, cutoff)        # (1, T)
    env = (zj * zk) * jnp.exp(-eta * (dij * dij + dik * dik)) * fc        # (1, T)

    # Power chain on two (1,T) rows only (zetas are powers of two); 2^(1-zeta)
    # prefactor and the envelope are folded in on (1,T) as well, so only the
    # final (N_ANG, T) assembly touches full-width vregs.
    bp = jnp.maximum(1.0 + cos, 0.0)                                      # lambda = +1
    bm = jnp.maximum(1.0 - cos, 0.0)                                      # lambda = -1
    bp2, bm2 = bp * bp, bm * bm
    bp4, bm4 = bp2 * bp2, bm2 * bm2
    bp8, bm8 = bp4 * bp4, bm4 * bm4
    rp = (bp * env, (0.5 * bp2) * env, (0.125 * bp4) * env, (0.0078125 * bp8) * env)
    rm = (bm * env, (0.5 * bm2) * env, (0.125 * bm4) * env, (0.0078125 * bm8) * env)

    # Column order (zeta, lambda) = (1,+),(1,-),(2,+),(2,-),(4,+),(4,-),(8,+),(8,-).
    # Constant (N_ANG, 1) iota columns drive the row selection.
    row = lax.broadcasted_iota(jnp.int32, (N_ANG, 1), 0)                  # (8, 1)
    zg = row >> 1                                                         # 0,0,1,1,2,2,3,3
    is_plus = (row & 1) == 0                                              # lambda = +1 rows
    sel_p = jnp.where(zg < 2, jnp.where(zg == 0, rp[0], rp[1]),
                      jnp.where(zg == 2, rp[2], rp[3]))                   # (8, T)
    sel_m = jnp.where(zg < 2, jnp.where(zg == 0, rm[0], rm[1]),
                      jnp.where(zg == 2, rm[2], rm[3]))                   # (8, T)
    ang = jnp.where(is_plus, sel_p, sel_m)                                # (8, T)

    atom_col = lax.broadcasted_iota(jnp.int32, (n_atoms, 1), 0)           # (n_atoms, 1)
    onehot = (idx == atom_col).astype(jnp.float32)                        # (n_atoms, T)
    out_ref[...] += lax.dot_general(
        onehot, ang, (((1,), (1,)), ((), ())),
        preferred_element_type=jnp.float32)


# ------------------------------ kernel wrappers ------------------------------
def _pad_1d(x, n, value):
    pad = n - x.shape[0]
    if pad == 0:
        return x
    return jnp.concatenate([x, jnp.full((pad,), value, x.dtype)], axis=0)


def _choose_tiling(n_items, n_fields, n_atoms, n_basis, num_cores, vmem_budget):
    """Pick (tile, per_core) from an explicit per-step VMEM budget.

    Per lane (f32 words): double-buffered input slab, one-hot (+ compare temp),
    basis rows / select temporaries, and misc (1, T) rows.
    """
    n_items = max(1, int(n_items))
    words_per_lane = 2 * n_fields + 2 * n_atoms + 6 * n_basis + 32
    fixed = 2 * n_atoms * n_basis * 4 * 2          # double-buffered resident accumulator
    avail = max(0, int(vmem_budget) - fixed)
    t_budget = (avail // (4 * words_per_lane)) // _LANE_ALIGN * _LANE_ALIGN
    t_budget = max(_LANE_ALIGN, t_budget)
    tile_max = min(TILE_MAX, t_budget)
    per_core = max(1, pl.cdiv(n_items, num_cores * tile_max))
    # shrink the tile to the smallest 256-multiple that still covers the input
    tile = min(tile_max, _round_up(pl.cdiv(n_items, num_cores * per_core), _LANE_ALIGN))
    return int(tile), int(per_core)


def _scatter_call(kernel, feat, n_atoms, n_basis, tile, per_core, num_cores, vmem_limit):
    n_fields = feat.shape[0]
    if num_cores > 1:
        # force a real 2-way TensorCore split on v7x
        dim_sem = (pltpu.CORE_PARALLEL, pltpu.ARBITRARY)
    else:
        dim_sem = ("arbitrary", "arbitrary")
    cp_kwargs = {"dimension_semantics": dim_sem}
    if vmem_limit is not None:
        cp_kwargs["vmem_limit_bytes"] = int(vmem_limit)

    partials = pl.pallas_call(
        kernel,
        out_shape=jax.ShapeDtypeStruct((num_cores, n_atoms, n_basis), jnp.float32),
        grid_spec=pltpu.PrefetchScalarGridSpec(
            num_scalar_prefetch=0,
            grid=(num_cores, per_core),
            in_specs=[pl.BlockSpec((n_fields, tile),
                                   lambda c, p, pc=per_core: (0, c * pc + p))],
            out_specs=pl.BlockSpec((None, n_atoms, n_basis),
                                   lambda c, p: (c, 0, 0)),
        ),
        compiler_params=pltpu.CompilerParams(**cp_kwargs),
    )(feat)
    if num_cores == 1:
        return partials[0]
    # sum the per-core partial accumulators (tiny: (num_cores, n_atoms, n_basis))
    return partials.sum(axis=0)


def radial_scatter(d_ij, zj, idx_i, n_atoms, *, num_cores, vmem_budget, vmem_limit):
    n_pairs = int(d_ij.shape[0])
    tile, per_core = _choose_tiling(n_pairs, 3, n_atoms, N_RBF, num_cores, vmem_budget)
    n_pad = num_cores * per_core * tile
    # Padding is doubly guarded: Z_j = 0 zeroes the basis row AND idx = n_atoms
    # never matches the one-hot iota. Do not change one fill value without the other.
    feat = jnp.stack([
        _pad_1d(d_ij.astype(jnp.float32), n_pad, 0.0),
        _pad_1d(zj.astype(jnp.float32), n_pad, 0.0),
        _pad_1d(idx_i.astype(jnp.float32), n_pad, float(n_atoms)),
    ], axis=0)                                                    # (3, n_pad)
    kern = functools.partial(_radial_kernel, n_atoms=n_atoms,
                             cutoff=CUTOFF, eta=ETA_RAD)
    return _scatter_call(kern, feat, n_atoms, N_RBF, tile, per_core,
                         num_cores, vmem_limit)


def angular_scatter(d_ij_a, d_ik_a, zj_a, zk_a, cos_theta, idx_i_t, n_atoms,
                    *, num_cores, vmem_budget, vmem_limit):
    n_tri = int(d_ij_a.shape[0])
    tile, per_core = _choose_tiling(n_tri, 6, n_atoms, N_ANG, num_cores, vmem_budget)
    n_pad = num_cores * per_core * tile
    # Same double guard as radial: Z_j = Z_k = 0 AND idx = n_atoms for padding.
    feat = jnp.stack([
        _pad_1d(d_ij_a.astype(jnp.float32), n_pad, 1.0),
        _pad_1d(d_ik_a.astype(jnp.float32), n_pad, 1.0),
        _pad_1d(zj_a.astype(jnp.float32), n_pad, 0.0),
        _pad_1d(zk_a.astype(jnp.float32), n_pad, 0.0),
        _pad_1d(cos_theta.astype(jnp.float32), n_pad, 0.0),
        _pad_1d(idx_i_t.astype(jnp.float32), n_pad, float(n_atoms)),
    ], axis=0)                                                    # (6, n_pad)
    kern = functools.partial(_angular_kernel, n_atoms=n_atoms,
                             cutoff=CUTOFF, eta=ETA_ANG)
    return _scatter_call(kern, feat, n_atoms, N_ANG, tile, per_core,
                         num_cores, vmem_limit)


# --------------------------- SymmetryFunctions.forward ---------------------------
def symmetry_functions_forward(inputs, symfunc_mean, symfunc_stddev):
    num_cores, vmem_budget, vmem_limit = _detect_tpu()

    atomic_numbers = inputs["Z"]
    n_atoms = atomic_numbers.shape[0]
    r_ij = inputs["Rij"]
    idx_i = inputs["idx_i"]
    idx_j = inputs["idx_j"]

    # TODO(synk): gather glue (Z[idx_j], per-triple gathers below) stays in XLA;
    # for very large neighbor lists it could move behind an in-kernel DMA gather.
    Zj = atomic_numbers[idx_j].astype(jnp.float32)
    d_ij = jnp.linalg.norm(r_ij, axis=1)                       # (n_pairs,)

    # radial part (Pallas: lane-dense basis expansion + MXU scatter_add)
    radial = radial_scatter(d_ij, Zj, idx_i, n_atoms,
                            num_cores=num_cores, vmem_budget=vmem_budget,
                            vmem_limit=vmem_limit)             # (n_atoms, N_RBF)

    # angular part
    idx_i_t = inputs["idx_i_triples"]
    idx_j_t = inputs["idx_j_triples"]
    idx_k_t = inputs["idx_k_triples"]
    r_ij_a = r_ij[idx_j_t]
    r_ik_a = r_ij[idx_k_t]
    d_ij_a = d_ij[idx_j_t]
    d_ik_a = d_ij[idx_k_t]
    Zj_a = Zj[idx_j_t]
    Zk_a = Zj[idx_k_t]
    # NOTE: like the original module, no epsilon guard on the distance product.
    cos_theta = jnp.sum(r_ij_a * r_ik_a, axis=1) / (d_ij_a * d_ik_a)

    angular = angular_scatter(d_ij_a, d_ik_a, Zj_a, Zk_a, cos_theta, idx_i_t,
                              n_atoms, num_cores=num_cores,
                              vmem_budget=vmem_budget,
                              vmem_limit=vmem_limit)           # (n_atoms, N_ANG)

    x = jnp.concatenate([radial, angular], axis=1)             # (n_atoms, N_ATOM_BASIS)
    x = (x - symfunc_mean) / symfunc_stddev
    return {"scalar_representation": x}


# ------------------------------- pure-JAX reference -------------------------------
def _reference(inputs, mu, zeta_vec, lam_vec, symfunc_mean, symfunc_stddev):
    Z = inputs["Z"]
    n_atoms = Z.shape[0]
    r_ij = inputs["Rij"]
    idx_i, idx_j = inputs["idx_i"], inputs["idx_j"]
    Zj = Z[idx_j].astype(jnp.float32)
    d_ij = jnp.linalg.norm(r_ij, axis=1)

    fc = _cosine_cutoff(d_ij[:, None], CUTOFF)
    rad = Zj[:, None] * jnp.exp(-ETA_RAD * (d_ij[:, None] - mu) ** 2) * fc
    rad = jnp.zeros((n_atoms, mu.shape[1]), jnp.float32).at[idx_i].add(rad)

    it, jt, kt = inputs["idx_i_triples"], inputs["idx_j_triples"], inputs["idx_k_triples"]
    rij_a, rik_a = r_ij[jt], r_ij[kt]
    dij_a, dik_a = d_ij[jt], d_ij[kt]
    Zj_a, Zk_a = Zj[jt], Zj[kt]
    cos = jnp.sum(rij_a * rik_a, axis=1) / (dij_a * dik_a)
    fca = _cosine_cutoff(dij_a[:, None], CUTOFF) * _cosine_cutoff(dik_a[:, None], CUTOFF)
    base = jnp.maximum(1.0 + lam_vec * cos[:, None], 0.0)
    ang = (Zj_a * Zk_a)[:, None] * jnp.exp2(1.0 - zeta_vec) * jnp.power(base, zeta_vec) \
        * jnp.exp(-ETA_ANG * (dij_a ** 2 + dik_a ** 2))[:, None] * fca
    ang = jnp.zeros((n_atoms, zeta_vec.shape[1]), jnp.float32).at[it].add(ang)

    x = jnp.concatenate([rad, ang], axis=1)
    return (x - symfunc_mean) / symfunc_stddev


# ------------------------------------ main ------------------------------------
if __name__ == "__main__":
    key = jax.random.PRNGKey(0)
    n_atoms, n_pairs, n_triples = 8, 100, 200

    k1, k2, k3, k4, k5, k6, k7 = jax.random.split(key, 7)
    atomic_numbers = jax.random.randint(k1, (n_atoms,), 1, 10)
    r_ij = jax.random.normal(k2, (n_pairs, 3), jnp.float32) * 1.5
    idx_i = jax.random.randint(k3, (n_pairs,), 0, n_atoms)
    idx_j = jax.random.randint(k4, (n_pairs,), 0, n_atoms)
    idx_i_triples = jax.random.randint(k5, (n_triples,), 0, n_atoms)
    idx_j_triples = jax.random.randint(k6, (n_triples,), 0, n_pairs)
    idx_k_triples = jax.random.randint(k7, (n_triples,), 0, n_pairs)

    inputs = {
        "Z": atomic_numbers,
        "Rij": r_ij,
        "idx_i": idx_i,
        "idx_j": idx_j,
        "idx_i_triples": idx_i_triples,
        "idx_j_triples": idx_j_triples,
        "idx_k_triples": idx_k_triples,
    }

    # host-side copies of the (baked-in) basis parameters, for the reference
    mu = (MU_MIN + MU_STEP * jnp.arange(N_RBF, dtype=jnp.float32))[None, :]       # (1, 16)
    zeta_vec = jnp.repeat(jnp.array(ZETAS, jnp.float32), len(LAMBDAS))[None, :]   # (1, 8)
    lam_vec = jnp.tile(jnp.array(LAMBDAS, jnp.float32), len(ZETAS))[None, :]      # (1, 8)
    symfunc_mean = jnp.zeros((1, N_ATOM_BASIS), jnp.float32)
    symfunc_stddev = jnp.ones((1, N_ATOM_BASIS), jnp.float32)
    # TODO(synk): `standardize()` (dataset-loop mean/std update) is training-time glue, not a kernel.

    out = symmetry_functions_forward(inputs, symfunc_mean, symfunc_stddev)
    x = jax.block_until_ready(out["scalar_representation"])
    assert x.shape == (n_atoms, N_ATOM_BASIS) and x.dtype == jnp.float32

    ref = _reference(inputs, mu, zeta_vec, lam_vec, symfunc_mean, symfunc_stddev)
    assert jnp.allclose(x, ref, rtol=1e-4, atol=1e-4), "mismatch vs. pure-JAX reference"

    print("KERNEL_OK")
</pallas_src>

<mosaic_0001>
module attributes {stable_mosaic.version = 11 : i64} {
  func.func @_radial_kernel(%arg0: i32, %arg1: i32, %arg2: memref<3x256xf32, #tpu.memory_space<vmem>>, %arg3: memref<1x8x16xf32, #tpu.memory_space<vmem>>) attributes {dimension_semantics = [#tpu.dimension_semantics<arbitrary>, #tpu.dimension_semantics<arbitrary>], iteration_bounds = array<i64: 1, 1>, scalar_prefetch = 0 : i64, scratch_operands = 0 : i64, tpu.core_type = #tpu.core_type<tc>, window_params = [{transform_indices = @transform_0, window_bounds = array<i64: 3, 256>}, {transform_indices = @transform_1, window_bounds = array<i64: 1, 8, 16>}]} {
    %c0_i32 = arith.constant 0 : i32
    %0 = arith.cmpi eq, %arg1, %c0_i32 : i32
    %1 = arith.extui %0 : i1 to i32
    %c0_i32_0 = arith.constant 0 : i32
    %2 = arith.cmpi ne, %1, %c0_i32_0 : i32
    scf.if %2 {
      %cst_19 = arith.constant 0.000000e+00 : f32
      %49 = vector.broadcast %cst_19 : f32 to vector<8x16xf32>
      %c0_20 = arith.constant 0 : index
      %c0_21 = arith.constant 0 : index
      %c0_22 = arith.constant 0 : index
      %50 = vector.load %arg3[%c0_20, %c0_21, %c0_22] : memref<1x8x16xf32, #tpu.memory_space<vmem>>, vector<1x8x16xf32>
      %51 = vector.shape_cast %50 : vector<1x8x16xf32> to vector<8x16xf32>
      %52 = vector.shape_cast %49 : vector<8x16xf32> to vector<1x8x16xf32>
      tpu.vector_store %arg3[%c0_20, %c0_21, %c0_22], %52 {strides = array<i32>} : memref<1x8x16xf32, #tpu.memory_space<vmem>>, vector<1x8x16xf32>,
    } else {
    }
    %c0 = arith.constant 0 : index
    %c0_1 = arith.constant 0 : index
    %3 = vector.load %arg2[%c0, %c0_1] : memref<3x256xf32, #tpu.memory_space<vmem>>, vector<1x256xf32>
    %c1 = arith.constant 1 : index
    %c0_2 = arith.constant 0 : index
    %4 = vector.load %arg2[%c1, %c0_2] : memref<3x256xf32, #tpu.memory_space<vmem>>, vector<1x256xf32>
    %c2 = arith.constant 2 : index
    %c0_3 = arith.constant 0 : index
    %5 = vector.load %arg2[%c2, %c0_3] : memref<3x256xf32, #tpu.memory_space<vmem>>, vector<1x256xf32>
    %6 = arith.fptosi %5 : vector<1x256xf32> to vector<1x256xi32>
    %7 = tpu.iota {dimensions = array<i32: 0>} : vector<16x1xi32>
    %8 = arith.sitofp %7 : vector<16x1xi32> to vector<16x1xf32>
    %cst = arith.constant 0.266666681 : f32
    %9 = vector.broadcast %cst : f32 to vector<16x1xf32>
    %10 = arith.mulf %9, %8 : vector<16x1xf32>
    %cst_4 = arith.constant 8.000000e-01 : f32
    %11 = vector.broadcast %cst_4 : f32 to vector<16x1xf32>
    %12 = arith.addf %11, %10 : vector<16x1xf32>
    %cst_5 = arith.constant 3.14159274 : f32
    %13 = vector.broadcast %cst_5 : f32 to vector<1x256xf32>
    %14 = arith.mulf %13, %3 : vector<1x256xf32>
    %cst_6 = arith.constant 5.000000e+00 : f32
    %15 = vector.broadcast %cst_6 : f32 to vector<1x256xf32>
    %16 = arith.divf %14, %15 : vector<1x256xf32>
    %17 = math.cos %16 : vector<1x256xf32>
    %cst_7 = arith.constant 1.000000e+00 : f32
    %18 = vector.broadcast %cst_7 : f32 to vector<1x256xf32>
    %19 = arith.addf %17, %18 : vector<1x256xf32>
    %cst_8 = arith.constant 5.000000e-01 : f32
    %20 = vector.broadcast %cst_8 : f32 to vector<1x256xf32>
    %21 = arith.mulf %20, %19 : vector<1x256xf32>
    %cst_9 = arith.constant 5.000000e+00 : f32
    %22 = vector.broadcast %cst_9 : f32 to vector<1x256xf32>
    %23 = arith.cmpf olt, %3, %22 : vector<1x256xf32>
    %cst_10 = arith.constant 0.000000e+00 : f32
    %24 = vector.broadcast %cst_10 : f32 to vector<1x256xf32>
    %25 = arith.select %23, %21, %24 : vector<1x256xi1>, vector<1x256xf32>
    %26 = vector.broadcast %3 : vector<1x256xf32> to vector<16x256xf32>
    %27 = vector.broadcast %12 : vector<16x1xf32> to vector<16x256xf32>
    %28 = arith.subf %26, %27 : vector<16x256xf32>
    %29 = arith.mulf %4, %25 : vector<1x256xf32>
    %cst_11 = arith.constant -4.000000e+00 : f32
    %30 = vector.broadcast %cst_11 : f32 to vector<16x256xf32>
    %31 = arith.mulf %30, %28 : vector<16x256xf32>
    %32 = arith.mulf %31, %28 : vector<16x256xf32>
    %33 = math.exp %32 : vector<16x256xf32>
    %34 = vector.broadcast %29 : vector<1x256xf32> to vector<16x256xf32>
    %35 = arith.mulf %34, %33 : vector<16x256xf32>
    %36 = tpu.iota {dimensions = array<i32: 0>} : vector<8x1xi32>
    %37 = vector.broadcast %6 : vector<1x256xi32> to vector<8x256xi32>
    %38 = vector.broadcast %36 : vector<8x1xi32> to vector<8x256xi32>
    %39 = arith.cmpi eq, %37, %38 : vector<8x256xi32>
    %40 = arith.extui %39 : vector<8x256xi1> to vector<8x256xi32>
    %41 = arith.sitofp %40 : vector<8x256xi32> to vector<8x256xf32>
    %c0_12 = arith.constant 0 : index
    %c0_13 = arith.constant 0 : index
    %c0_14 = arith.constant 0 : index
    %42 = vector.load %arg3[%c0_12, %c0_13, %c0_14] : memref<1x8x16xf32, #tpu.memory_space<vmem>>, vector<1x8x16xf32>
    %43 = vector.shape_cast %42 : vector<1x8x16xf32> to vector<8x16xf32>
    %cst_15 = arith.constant dense<0.000000e+00> : vector<8x16xf32>
    %44 = tpu.matmul %41, %35, %cst_15 {dimension_numbers = #tpu.dot_dimension_numbers<[1], [1], [0], [0], [0, 0, 1, 0], [], []>} : vector<8x256xf32>, vector<16x256xf32>, vector<8x16xf32> -> vector<8x16xf32>
    %45 = arith.addf %43, %44 : vector<8x16xf32>
    %c0_16 = arith.constant 0 : index
    %c0_17 = arith.constant 0 : index
    %c0_18 = arith.constant 0 : index
    %46 = vector.load %arg3[%c0_16, %c0_17, %c0_18] : memref<1x8x16xf32, #tpu.memory_space<vmem>>, vector<1x8x16xf32>
    %47 = vector.shape_cast %46 : vector<1x8x16xf32> to vector<8x16xf32>
    %48 = vector.shape_cast %45 : vector<8x16xf32> to vector<1x8x16xf32>
    tpu.vector_store %arg3[%c0_16, %c0_17, %c0_18], %48 {strides = array<i32>} : memref<1x8x16xf32, #tpu.memory_space<vmem>>, vector<1x8x16xf32>,
    return
  }
  func.func @transform_0(%arg0: i32, %arg1: i32) -> (i32, i32) {
    %c1_i32 = arith.constant 1 : i32
    %0 = arith.muli %arg0, %c1_i32 : i32
    %1 = arith.addi %0, %arg1 : i32
    %c0_i32 = arith.constant 0 : i32
    %c0_i32_0 = arith.constant 0 : i32
    return %c0_i32, %1 : i32, i32
  }
  func.func @transform_1(%arg0: i32, %arg1: i32) -> (i32, i32, i32) {
    %c0_i32 = arith.constant 0 : i32
    %c0_i32_0 = arith.constant 0 : i32
    %c0_i32_1 = arith.constant 0 : i32
    return %arg0, %c0_i32, %c0_i32_0 : i32, i32, i32
  }
}

</mosaic_0001>

<bundles_post_ra>
// kernel: tpu_custom_call.1
= control target key start
LH: loop header
LB: loop body
LE: loop exit
PB: predicated region body
PF: predicated region fallthrough
CT: control target
= control target key end

     0   :  { %6 = vsyncpa [#allocation3], 0  ;;  %s519_s0 = inlined_call_operand.hbm [shape: f32[3,256], index: 0, kind: input, shape index: {}]   ;;  %s520_s1 = inlined_call_operand.hbm [shape: f32[1,8,16], index: 1, kind: output, shape index: {}]  }
   0x1   :  { %7 = vsyncpa [#allocation4], 0  ;;  %s396_s6 = smov [#allocation2]   ;;  %s348_s10 = scalar_lea.hbm %s519_s0, 128 }
   0x2   :  { %s18_s7 = sshll.u32 %s396_s6, 4  ;;  %p349_p0 = scmp.ne.s32.totalorder %s519_s0, %s348_s10  ;;  %s19_s7 = int_to_ptr.vmem [resolvable:$true] %s18_s7 }
   0x3   :  { %p352_p1 = scmp.lt.u32.totalorder %s348_s10, %s519_s0 }
   0x5   :  { %p354_p2 = pnand %p352_p1, %p349_p0 }
   0x7   :  { %357 = shalt.err (!%p354_p2)
}
   0x8   :  { %s358_s15 = scalar_lea.vmem %s19_s7, 128  ;;  %p363_p4 = scmp.lt.s32.totalorder %s19_s7, %s19_s7 }
   0x9   :  { %p359_p3 = scmp.ne.s32.totalorder %s19_s7, %s358_s15  ;;  %p364_p5 = scmp.lt.s32.totalorder %s358_s15, %s358_s15 }
   0xb   :  { %p365_p6 = por %p364_p5, %p363_p4 }
   0xd   :  { %p366_p7 = pnand %p365_p6, %p359_p3 }
   0xf   :  { %369 = shalt.err (!%p366_p7)
}
  0x10   :  { %21 = dma.hbm_to_vmem [thread:$0]  %s519_s0, 128, %s19_s7, [#allocation3]  }
  0x11   :  { %392 = dma.done.wait [#allocation3], 128  }
  0x12   :  { %393 = vsyncadd [#allocation3], 4294967168  ;;  %vm31_vm0 = vcmask 130048   ;;  %v39_v0 = vlaneseq  ;;  %v397_v1 = vmov 0.0   ;;  %v398_v27 = vmov 1.0   ;;  %s405_s0 = smov [#allocation5]  }
  0x13   :  { %32 = vst.msk [vmem:[#allocation5] sm:$0xff] %vm31_vm0, %v397_v1  ;;  %v438_v7 = vld [vmem:[#allocation2] ss:$4 sm:$0x3]  ;;  %v399_v33 = vmov 683565275  }
  0x14   :  { %v429_v2 = vshrl.u32 %v39_v0, 7  ;;  %v48_v9 = vmul.f32 3.1415927, %v438_v7  ;;  %v37_v12 = vld [vmem:[#allocation2 + $0x2] ss:$4 sm:$0x3] }
  0x15   :  { %v320_v15 = vtrunc.f32 %v37_v12  ;;  %v400_v35 = vmov 2475754826   ;;  %v401_v37 = vmov 2131351028   ;;  %v402_v39 = vmov 2102212464  }
  0x16   :  { %v42_v3 = vcvt.s32.f32 %v429_v2  ;;  %v433_v4 = vsub.s32 1, %v429_v2  ;;  %v436_v5 = vsub.s32 0, %v429_v2  ;;  %v449_v13 = vmul.f32 0.2, %v48_v9  ;;  %s299_s18 = sshll.u32 %s405_s0, 4  ;;  %s300_s18 = int_to_ptr.vmem [resolvable:$true] %s299_s18 }
  0x17   :  { %v321_v19 = vcvt.f32.s32 %v320_v15  ;;  %v403_v41 = vmov 920167782   ;;  %v404_v48 = vmov 1326507024   ;;  %s370_s19 = scalar_lea.vmem %s300_s18, 128  ;;  %p375_p9 = scmp.lt.s32.totalorder %s300_s18, %s300_s18 }
  0x18   :  { %v44_v6 = vmul.f32 0.26666668, %v42_v3  ;;  %v443_v10 = vrot.slane %v438_v7, %v433_v4  ;;  %v447_v11 = vrot.slane %v438_v7, %v436_v5  ;;  %v54_v17 = vand.u32 2139095040, %v449_v13  ;;  %p371_p8 = scmp.ne.s32.totalorder %s300_s18, %s370_s19  ;;  %p376_p10 = scmp.lt.s32.totalorder %s370_s19, %s370_s19 }
  0x19   :  { %v51_v20 = vand.u32 2147483647, %v449_v13  ;;  %v212_v22 = vrot.slane %v321_v19, %v433_v4  ;;  %v208_v23 = vrot.slane %v321_v19, %v436_v5  ;;  %vm53_vm10 = vcmp.lt.s32.totalorder %v449_v13, 0 }
  0x1a   :  { %v46_v8 = vadd.f32 0.8, %v44_v6  ;;  %v55_v18 = vshrl.u32 %v54_v17, 23  ;;  %vm143_vm15 = vweird.f32 %v449_v13  ;;  %p377_p11 = por %p376_p10, %p375_p9 }
  0x1b   :  { %vm214_vm1 = vcmp.eq.s32.totalorder %v212_v22, %v429_v2  ;;  %vm463_vm2 = vcmp.eq.s32.totalorder %v208_v23, %v429_v2  ;;  %v58_v26 = vand.u32 8388607, %v51_v20  ;;  %vm484_vm11 = vcmp.le.f32.partialorder %v51_v20, 0.7853982 }
  0x1c   :  { %v452_v14 = vsub.f32 %v443_v10, %v46_v8  ;;  %v455_v16 = vsub.f32 %v447_v11, %v46_v8  ;;  %v308_v21 = vadd.s32 4294967169, %v55_v18  ;;  %314 = vmatprep.mubr.msk.f32.mxu0 %vm214_vm1, %v398_v27  ;;  %vm156_vm1 = vcmp.lt.f32.partialorder %v438_v7, 5.0  ;;  %v219_v7 = vld [vmem:[#allocation5] sm:$0xff]  ;;  %p378_p12 = pnand %p377_p11, %p371_p8 }
  0x1d   :  { %v59_v30 = vor.u32 8388608, %v58_v26 }
  0x1e   :  { %v61_v24 = vadd.s32 1, %v308_v21 }
  0x1f   :  { %v99_v50 = vshll.u32 %v59_v30, 8 }
  0x20   :  { %vm62_vm3 = vcmp.gt.s32.totalorder %v61_v24, 0 }
  0x21   :  { %v63_v28 = vsel %vm62_vm3, %v61_v24, 0 }
  0x22   :  { %v65_v29 = vand.u32 31, %v63_v28  ;;  %v64_v31 = vshrl.u32 %v63_v28, 5 }
  0x24   :  { %v66_v32 = vsub.s32 32, %v65_v29  ;;  %v68_v34 = vshll.u32 %v399_v33, %v65_v29  ;;  %v71_v36 = vshll.u32 %v400_v35, %v65_v29  ;;  %v74_v38 = vshll.u32 %v401_v37, %v65_v29 }
  0x25   :  { %v77_v40 = vshll.u32 %v402_v39, %v65_v29  ;;  %v80_v42 = vshll.u32 %v403_v41, %v65_v29  ;;  %vm83_vm4 = vcmp.lt.s32.totalorder %v64_v31, 1  ;;  %vm86_vm5 = vcmp.lt.s32.totalorder %v64_v31, 4 }
  0x26   :  { %v67_v43 = vshrl.u32 %v399_v33, %v66_v32  ;;  %v69_v44 = vshrl.u32 %v400_v35, %v66_v32  ;;  %v72_v45 = vshrl.u32 %v401_v37, %v66_v32  ;;  %v75_v46 = vshrl.u32 %v402_v39, %v66_v32 }
  0x27   :  { %v78_v47 = vshrl.u32 %v403_v41, %v66_v32  ;;  %v81_v49 = vshrl.u32 %v404_v48, %v66_v32  ;;  %vm84_vm6 = vcmp.lt.s32.totalorder %v64_v31, 2  ;;  %vm85_vm7 = vcmp.lt.s32.totalorder %v64_v31, 3 }
  0x28   :  { %v70_v51 = vor.u32 %v69_v44, %v68_v34  ;;  %v73_v52 = vor.u32 %v72_v45, %v71_v36  ;;  %v76_v53 = vor.u32 %v75_v46, %v74_v38  ;;  %v41_v31 = vadd.s32 8, %v429_v2 }
  0x29   :  { %v79_v54 = vor.u32 %v78_v47, %v77_v40  ;;  %v82_v55 = vor.u32 %v81_v49, %v80_v42 }
  0x2a   :  { %v87_v56 = vsel %vm83_vm4, %v67_v43, %v70_v51  ;;  %v88_v57 = vsel %vm86_vm5, %v76_v53, 2102212464  ;;  %v91_v58 = vsel %vm83_vm4, %v70_v51, %v73_v52  ;;  %v95_v59 = vsel %vm83_vm4, %v73_v52, %v76_v53 }
  0x2b   :  { %v89_v60 = vsel %vm85_vm7, %v73_v52, %v88_v57  ;;  %v92_v61 = vsel %vm86_vm5, %v79_v54, 920167782  ;;  %v96_v62 = vsel %vm86_vm5, %v82_v55, 1326507024  ;;  %v43_v35 = vcvt.s32.f32 %v41_v31 }
  0x2c   :  { %v93_v63 = vsel %vm85_vm7, %v76_v53, %v92_v61  ;;  %v97_v0 = vsel %vm85_vm7, %v79_v54, %v96_v62  ;;  %v90_v1 = vsel %vm84_vm6, %v87_v56, %v89_v60  ;;  %v175_v54 = vmul.f32 -4.0, %v452_v14 }
  0x2d   :  { %v94_v3 = vsel %vm84_vm6, %v91_v58, %v93_v63  ;;  %v98_v6 = vsel %vm84_vm6, %v95_v59, %v97_v0  ;;  %v106_v17 = vmul.u32 %v99_v50, %v90_v1  ;;  %v45_v41 = vmul.f32 0.26666668, %v43_v35 }
  0x2e   :  { %v470_v8 = vmul.u32.u64.low %v99_v50, %v98_v6  ;;  %v471_v9 = vmul.u32.u64.high %v99_v50, %v98_v6, %v470_v8  ;;  %v473_v12 = vmul.u32.u64.low %v99_v50, %v94_v3  ;;  %v474_v15 = vmul.u32.u64.high %v99_v50, %v94_v3, %v473_v12 }
  0x2f   :  { %v47_v46 = vadd.f32 0.8, %v45_v41  ;;  %v174_v56 = vmul.f32 -4.0, %v455_v16  ;;  %v179_v59 = vmul.f32 %v175_v54, %v452_v14 }
  0x30   :  { %vm108_vm8 = vc.u32 %v471_v9, %v473_v12  ;;  %v109_v18 = vadd.s32 1, %v474_v15  ;;  %v107_v33 = vadd.s32 %v473_v12, %v471_v9 }
  0x31   :  { %v172_v51 = vsub.f32 %v443_v10, %v47_v46  ;;  %v171_v52 = vsub.f32 %v447_v11, %v47_v46  ;;  %v178_v11 = vmul.f32 %v174_v56, %v455_v16  ;;  %v184_v63 = vmul.f32 1.442695, %v179_v59 }
  0x32   :  { %v110_v19 = vsel %vm108_vm8, %v109_v18, %v474_v15 }
  0x33   :  { %v111_v21 = vadd.s32 %v110_v19, %v106_v17  ;;  %v177_v20 = vmul.f32 -4.0, %v172_v51  ;;  %v176_v58 = vmul.f32 -4.0, %v171_v52  ;;  %v182_v0 = vmul.f32 1.442695, %v178_v11 }
  0x34   :  { %v35_v19 = vld [vmem:[#allocation2 + $0x1] ss:$4 sm:$0x3] }
  0x35   :  { %v112_v22 = vadd.s32 536870912, %v111_v21  ;;  %v181_v60 = vmul.f32 %v177_v20, %v172_v51  ;;  %v180_v61 = vmul.f32 %v176_v58, %v171_v52 }
  0x37   :  { %v113_v23 = vshrl.u32 %v112_v22, 30  ;;  %v188_v1 = vmul.f32 1.442695, %v181_v60  ;;  %v186_v3 = vmul.f32 1.442695, %v180_v61 }
  0x39   :  { %v114_v24 = vshll.u32 %v113_v23, 30  ;;  %v137_v50 = vsub.s32 4, %v113_v23 }
  0x3b   :  { %v115_v26 = vsub.s32 %v111_v21, %v114_v24  ;;  %v138_v57 = vsel %vm53_vm10, %v137_v50, %v113_v23 }
  0x3c   :  { %v140_v10 = vsel %vm484_vm11, 0, %v138_v57 }
  0x3d   :  { %v117_v28 = vsub.s32 0, %v115_v26  ;;  %v144_v62 = vand.u32 3, %v140_v10 }
  0x3f   :  { %v309_v29 = vmin.u32 %v117_v28, %v115_v26  ;;  %vm149_vm12 = vcmp.eq.s32.totalorder %v144_v62, 2  ;;  %vm146_vm13 = vcmp.eq.s32.totalorder %v144_v62, 0  ;;  %vm145_vm14 = vcmp.lt.s32.totalorder %v144_v62, 2 }
  0x41   :  { %v119_v30 = vclz %v309_v29 }
  0x43   :  { %v310_v32 = vadd.s32 4294967294, %v119_v30 }
  0x45   :  { %vm311_vm9 = vcmp.lt.s32.totalorder %v310_v32, 0 }
  0x46   :  { %v122_v34 = vsel %vm311_vm9, 0, %v310_v32 }
  0x47   :  { %v123_v36 = vsub.s32 32, %v122_v34  ;;  %v124_v37 = vshll.u32 %v115_v26, %v122_v34  ;;  %v127_v38 = vsub.s32 4294967266, %v122_v34 }
  0x49   :  { %v125_v39 = vshrl.u32 %v107_v33, %v123_v36  ;;  %v128_v40 = vadd.s32 127, %v127_v38 }
  0x4b   :  { %v126_v42 = vor.u32 %v125_v39, %v124_v37  ;;  %v129_v43 = vshll.u32 %v128_v40, 23 }
  0x4d   :  { %v130_v44 = vor.u32 4788187, %v129_v43  ;;  %v133_v45 = vcvt.s32.f32 %v126_v42 }
  0x4f   :  { %v131_v47 = vand.u32 2147483647, %v130_v44 }
  0x51   :  { %v134_v48 = vmul.f32 %v133_v45, %v131_v47 }
  0x53   :  { %v135_v49 = vxor.u32 2147483648, %v134_v48 }
  0x55   :  { %v136_v53 = vsel %vm53_vm10, %v135_v49, %v134_v48 }
  0x56   :  { %v139_v55 = vsel %vm484_vm11, %v449_v13, %v136_v53 }
  0x57   :  { %336 = vcosq.f32 %v139_v55 }
  0x58   :  { %338 = vsinq.f32 %v139_v55 }
  0x59   :  { %340 = vpow2.f32 %v184_v63 }
  0x5a   :  { %342 = vpow2.f32 %v182_v0 }
  0x5b   :  { %344 = vpow2.f32 %v188_v1 }
  0x5c   :  { %346 = vpow2.f32 %v186_v3 }
  0x61   :  { %v337_v6 = vpop.eup %336 }
  0x62   :  { %v339_v8 = vpop.eup %338  ;;  %v150_v9 = vxor.u32 2147483648, %v337_v6 }
  0x63   :  { %v147_v14 = vxor.u32 2147483648, %v339_v8  ;;  %v341_v22 = vpop.eup %340 }
  0x64   :  { %v151_v16 = vsel %vm149_vm12, %v150_v9, %v339_v8  ;;  %v343_v23 = vpop.eup %342 }
  0x65   :  { %v148_v12 = vsel %vm146_vm13, %v337_v6, %v147_v14  ;;  %v345_v26 = vpop.eup %344 }
  0x66   :  { %v152_v15 = vsel %vm145_vm14, %v148_v12, %v151_v16  ;;  %v347_v29 = vpop.eup %346 }
  0x67   :  { %v153_v17 = vsel %vm143_vm15, nan, %v152_v15 }
  0x68   :  { %v154_v18 = vadd.f32 1.0, %v153_v17 }
  0x6a   :  { %v155_v21 = vmul.f32 0.5, %v154_v18 }
  0x6c   :  { %v157_v24 = vsel %vm156_vm1, %v155_v21, 0.0 }
  0x6d   :  { %v173_v28 = vmul.f32 %v157_v24, %v35_v19 }
  0x6f   :  { %v198_v30 = vrot.slane %v173_v28, %v433_v4  ;;  %v194_v13 = vrot.slane %v173_v28, %v436_v5 }
  0x71   :  { %v202_v31 = vmul.f32 %v341_v22, %v198_v30  ;;  %v204_v32 = vmul.f32 %v345_v26, %v198_v30  ;;  %v201_v33 = vmul.f32 %v343_v23, %v194_v13  ;;  %v203_v34 = vmul.f32 %v347_v29, %v194_v13 }
  0x73   :  { %v316_v35 = vpack.c.bf16 %v204_v32, %v202_v31  ;;  %v318_v36 = vpack.c.bf16 %v203_v34, %v201_v33 }
  0x75   :  { %317 = vmatprep.subr.bf16.mxu0 %v316_v35 }
  0x76   :  { %319 = vmatpush1.bf16.xpose.msra.mxu0 %v318_v36 }
  0x7d   :  { %315 = vmatmul.mubr.msk.f32.vlgmr.msra.gmra.mrb[0].mxu0 %vm463_vm2, %v398_v27 }
 0x150   :  { %v286_v37 = vpop.f32.mrb[0].mxu0 }
 0x151   :  { %v290_v38 = vadd.f32 %v286_v37, %v219_v7  ;;  %v288_v4 = vpop.f32.mrb[1].mxu0 }
 0x153   :  { %292 = vst.msk [vmem:[#allocation5] sm:$0xff] %vm31_vm0, %v290_v38 }
 0x154   :  { %381 = shalt.err (!%p378_p12)
}
 0x155   :  { %s382_s22 = scalar_lea.hbm %s520_s1, 128 }
 0x156   :  { %p383_p13 = scmp.ne.s32.totalorder %s520_s1, %s382_s22  ;;  %p386_p0 = scmp.lt.u32.totalorder %s382_s22, %s520_s1 }
 0x158   :  { %p388_p1 = pnand %p386_p0, %p383_p13 }
 0x15a   :  { %391 = shalt.err (!%p388_p1)
}
 0x15b   :  { %302 = dma.vmem_to_hbm [thread:$0]  %s300_s18, 128, %s520_s1, [#allocation4]  }
 0x15c   :  { %394 = dma.done.wait [#allocation4], 128  }
 0x15d   :  { %395 = vsyncadd [#allocation4], 4294967168 }
 0x15e   :  { %306 = vsyncpa [#allocation3], 1 }
 0x15f   :  { %307 = vsyncpa [#allocation4], 1 }

</bundles_post_ra>
